<compile_context>
chip_gen: v7x
topology: tpu7x:2x2x1
jax: 0.10.0
libtpu: 0.0.40
codegen_flags: <defaults>
</compile_context>

<pallas_src>
import jax
import jax.numpy as jnp
import numpy as np
from jax import lax
from jax.experimental import pallas as pl
from jax.experimental.pallas import tpu as pltpu

MATMUL_DTYPE = jnp.bfloat16          # MXU operand dtype for the big matmuls; accumulation is f32.
VMEM_LIMIT = 32 * 1024 * 1024        # explicit scoped-VMEM cap (v5e default is only 16 MiB)


# ----------------------- Kernel A: conv1 (im2col matmul) + ReLU -----------------------

def _conv_relu_kernel(a_ref, w_ref, o_ref):
    acc = jnp.dot(a_ref[...], w_ref[...], preferred_element_type=jnp.float32)
    o_ref[...] = jnp.maximum(acc, 0.0).astype(o_ref.dtype)


def conv_relu(patches, w, *, tm=512):
    M, K = patches.shape
    _, N = w.shape
    tm = min(tm, M)
    return pl.pallas_call(
        _conv_relu_kernel,
        out_shape=jax.ShapeDtypeStruct((M, N), MATMUL_DTYPE),
        grid=(pl.cdiv(M, tm),),
        in_specs=[pl.BlockSpec((tm, K), lambda i: (i, 0)),
                  pl.BlockSpec((K, N), lambda i: (0, 0))],
        out_specs=pl.BlockSpec((tm, N), lambda i: (i, 0)),
        compiler_params=pltpu.CompilerParams(
            dimension_semantics=("parallel",),
            vmem_limit_bytes=VMEM_LIMIT),
    )(patches, w)


# --------------- Kernel B: LSTM input projection (hoisted, K-tiled, bf16 lane-dense out) ---------------

def _proj_kernel(x_ref, w_ref, b_ref, o_ref, acc_ref):
    @pl.when(pl.program_id(1) == 0)
    def _():
        acc_ref[...] = jnp.zeros_like(acc_ref)

    acc_ref[...] += jnp.dot(x_ref[...], w_ref[...], preferred_element_type=jnp.float32)

    @pl.when(pl.program_id(1) == pl.num_programs(1) - 1)
    def _():
        o_ref[...] = (acc_ref[...] + b_ref[...]).astype(o_ref.dtype)


def input_projection(x2, w, b, *, tm=256, tk=2048):
    M, D = x2.shape
    G = w.shape[1]
    tm = min(tm, M)
    tk = min(tk, D)
    Dp = pl.cdiv(D, tk) * tk
    if Dp != D:   # zero-pad the contraction dim so K-tiling never accumulates out-of-bounds garbage
        x2 = jnp.pad(x2, ((0, 0), (0, Dp - D)))
        w = jnp.pad(w, ((0, Dp - D), (0, 0)))
    return pl.pallas_call(
        _proj_kernel,
        out_shape=jax.ShapeDtypeStruct((M, G), MATMUL_DTYPE),   # gx stored bf16 (halves HBM traffic)
        grid=(pl.cdiv(M, tm), Dp // tk),
        in_specs=[pl.BlockSpec((tm, tk), lambda i, k: (i, k)),
                  pl.BlockSpec((tk, G), lambda i, k: (k, 0)),
                  pl.BlockSpec((1, G), lambda i, k: (0, 0))],
        out_specs=pl.BlockSpec((tm, G), lambda i, k: (i, 0)),
        scratch_shapes=[pltpu.VMEM((tm, G), jnp.float32)],
        compiler_params=pltpu.CompilerParams(
            dimension_semantics=("parallel", "arbitrary"),
            vmem_limit_bytes=VMEM_LIMIT),
    )(x2, w, b)


# ------------- Kernel C: whole LSTM recurrence (in-kernel loop) + fused fc1∘fc2 + log_softmax -------------

def _lstm_head_kernel(gx_ref, whh_ref, wh_ref, bh_ref, o_ref):
    T, B, _ = gx_ref.shape
    H = whh_ref.shape[0]

    def step(t, carry):
        h, c = carry
        # Input projection was precomputed; only the bf16 recurrent matmul lives on the serial path.
        gates = gx_ref[t].astype(jnp.float32) + jnp.dot(
            h.astype(whh_ref.dtype), whh_ref[...], preferred_element_type=jnp.float32)   # (B, 4H) f32
        i = jax.nn.sigmoid(gates[:, 0 * H:1 * H])
        f = jax.nn.sigmoid(gates[:, 1 * H:2 * H])
        g = jnp.tanh(gates[:, 2 * H:3 * H])
        o = jax.nn.sigmoid(gates[:, 3 * H:4 * H])
        c_new = f * c + i * g
        h_new = o * jnp.tanh(c_new)
        return h_new, c_new

    h0 = jnp.zeros((B, H), jnp.float32)
    c0 = jnp.zeros((B, H), jnp.float32)
    h_last, _ = lax.fori_loop(0, T, step, (h0, c0), unroll=True)

    # Head: fc2(fc1(h)) with W_head/b_head pre-contracted at trace time, then log_softmax.
    z = jnp.dot(h_last, wh_ref[...], preferred_element_type=jnp.float32) + bh_ref[...]
    m = jnp.max(z, axis=1, keepdims=True)
    lse = jnp.log(jnp.sum(jnp.exp(z - m), axis=1, keepdims=True)) + m
    o_ref[...] = (z - lse).astype(o_ref.dtype)


def lstm_head(gx, whh_t, w_head, b_head):
    T, B, G = gx.shape
    H = whh_t.shape[0]
    n_class = w_head.shape[1]
    return pl.pallas_call(
        _lstm_head_kernel,
        out_shape=jax.ShapeDtypeStruct((B, n_class), jnp.float32),
        grid=(1,),
        in_specs=[pl.BlockSpec((T, B, G), lambda i: (0, 0, 0)),
                  pl.BlockSpec((H, G), lambda i: (0, 0)),
                  pl.BlockSpec((H, n_class), lambda i: (0, 0)),
                  pl.BlockSpec((1, n_class), lambda i: (0, 0))],
        out_specs=pl.BlockSpec((B, n_class), lambda i: (0, 0)),
        compiler_params=pltpu.CompilerParams(
            dimension_semantics=("arbitrary",),
            vmem_limit_bytes=VMEM_LIMIT),
    )(gx, whh_t, w_head, b_head)


# ----------------------------------- JAX glue -----------------------------------

def im2col_stride2(x_nchw, k=3, s=2):
    """(N, C, H, W) -> (N*OH*OW, C*k*k); column order (c, kh, kw) matches torch Conv2d weight flattening."""
    N, C, H, W = x_nchw.shape
    OH = (H - k) // s + 1
    OW = (W - k) // s + 1
    cols = []
    for kh in range(k):
        for kw in range(k):
            cols.append(x_nchw[:, :, kh:kh + s * OH:s, kw:kw + s * OW:s])   # (N, C, OH, OW)
    p = jnp.stack(cols, axis=2)                        # (N, C, k*k, OH, OW)
    p = p.transpose(0, 3, 4, 1, 2)                     # (N, OH, OW, C, k*k)
    return p.reshape(N * OH * OW, C * k * k), OH, OW


def fmri_forward(x, p):
    B, T, C, Hin, Win = x.shape
    ndf = p["conv_w"].shape[0]
    hidden = p["w_hh"].shape[1]
    k, s = 3, 2

    # Time-major up front (fused with the bf16 cast) -> all later reshapes are free; no gx transpose/pad.
    x_tb = x.transpose(1, 0, 2, 3, 4).reshape(T * B, C, Hin, Win).astype(MATMUL_DTYPE)

    # --- conv1 + ReLU (bf16 MXU operands, f32 accumulate) ---
    # TODO(synk): im2col patches still materialize once in HBM; in-kernel patch extraction (pl.ANY + DMA)
    #             would remove this extra pass for realistic fMRI image sizes.
    patches, OH, OW = im2col_stride2(x_tb, k, s)                          # (T*B*OH*OW, C*9), rows (t,b,oh,ow)
    wc = p["conv_w"].reshape(ndf, C * k * k).T.astype(MATMUL_DTYPE)       # (C*9, ndf)
    y = conv_relu(patches, wc)                                            # (T*B*P, ndf) bf16

    P = OH * OW
    D = ndf * P

    # Conv output flattens per (t,b) in (oh,ow,ndf) order; permute W_ih's columns once (tiny, trace-time)
    # so no NCHW transpose of the activations is needed: W_perm[:, p*ndf+d] = W_ih[:, d*P+p].
    w_ih_perm = p["w_ih"].reshape(4 * hidden, ndf, P).transpose(0, 2, 1).reshape(4 * hidden, D)
    b_gate = (p["b_ih"] + p["b_hh"]).reshape(1, 4 * hidden).astype(jnp.float32)

    # --- LSTM input projection hoisted out of the time loop: one (T*B, D) @ (D, 4H) matmul ---
    gx = input_projection(y.reshape(T * B, D),
                          w_ih_perm.T.astype(MATMUL_DTYPE), b_gate)       # (T*B, 4H) bf16
    gx = gx.reshape(T, B, 4 * hidden)                                     # free: rows already in (t, b) order

    # fc1 -> fc2 has no nonlinearity in between -> algebraically fuse at trace time (one head matmul).
    w_head = (p["w1"].T @ p["w2"].T).astype(jnp.float32)                  # (H, nClass)
    b_head = (p["b1"] @ p["w2"].T + p["b2"]).reshape(1, -1).astype(jnp.float32)

    # --- LSTM recurrence (single kernel, in-kernel loop over T) + fused head + log_softmax ---
    return lstm_head(gx, p["w_hh"].T.astype(MATMUL_DTYPE), w_head, b_head)   # (B, nClass)


def fmri_forward_ref(x, p):
    """Pure-JAX f32 reference mirroring the PyTorch forward."""
    B, T, C, Hin, Win = x.shape
    ndf = p["conv_w"].shape[0]
    x_bt = x.reshape(B * T, C, Hin, Win)
    patches, OH, OW = im2col_stride2(x_bt)
    y = jnp.maximum(patches @ p["conv_w"].reshape(ndf, -1).T, 0.0)
    y = y.reshape(B * T, OH, OW, ndf).transpose(0, 3, 1, 2)                # torch NCHW order
    r_in = y.reshape(B, T, -1)
    hdim = p["w_hh"].shape[1]
    h = jnp.zeros((B, hdim), jnp.float32)
    c = jnp.zeros((B, hdim), jnp.float32)
    for t in range(T):
        gates = r_in[:, t, :] @ p["w_ih"].T + p["b_ih"] + h @ p["w_hh"].T + p["b_hh"]
        i = jax.nn.sigmoid(gates[:, :hdim])
        f = jax.nn.sigmoid(gates[:, hdim:2 * hdim])
        g = jnp.tanh(gates[:, 2 * hdim:3 * hdim])
        o = jax.nn.sigmoid(gates[:, 3 * hdim:])
        c = f * c + i * g
        h = o * jnp.tanh(c)
    z = h @ p["w1"].T + p["b1"]
    z = z @ p["w2"].T + p["b2"]
    return jax.nn.log_softmax(z, axis=1)


def init_params(key, n_x, ndf, n_class, to_lstm, hidden=128):
    ks = jax.random.split(key, 9)

    def u(k_, shape, fan_in):
        bound = 1.0 / float(np.sqrt(fan_in))
        return jax.random.uniform(k_, shape, jnp.float32, -bound, bound)

    return {
        "conv_w": u(ks[0], (ndf, n_x, 3, 3), n_x * 9),       # Conv2d(nX, ndf, 3, 2, bias=False)
        "w_ih": u(ks[1], (4 * hidden, to_lstm), hidden),     # LSTM weight_ih_l0
        "w_hh": u(ks[2], (4 * hidden, hidden), hidden),      # LSTM weight_hh_l0
        "b_ih": u(ks[3], (4 * hidden,), hidden),
        "b_hh": u(ks[4], (4 * hidden,), hidden),
        "w1": u(ks[5], (ndf, hidden), hidden),               # fc1: Linear(128, ndf)
        "b1": u(ks[6], (ndf,), hidden),
        "w2": u(ks[7], (n_class, ndf), ndf),                 # fc2: Linear(ndf, nClass)
        "b2": u(ks[8], (n_class,), ndf),
    }


if __name__ == "__main__":
    # Small "params": batchSize=2, img_timesteps=4, nX=4, nY=16, nZ=16, ndf=8, nClass=3
    B, T, C, Hin, Win = 2, 4, 4, 16, 16
    ndf, n_class, hidden = 8, 3, 128
    OH = (Hin - 3) // 2 + 1
    OW = (Win - 3) // 2 + 1
    to_lstm = ndf * OH * OW                      # self._to_lstm

    key = jax.random.PRNGKey(0)
    k_x, k_p = jax.random.split(key)
    x = jax.random.normal(k_x, (B, T, C, Hin, Win), dtype=jnp.float32)
    params = init_params(k_p, C, ndf, n_class, to_lstm, hidden)

    out = jax.block_until_ready(fmri_forward(x, params))
    ref = jax.block_until_ready(fmri_forward_ref(x, params))

    assert out.shape == (B, n_class), out.shape
    max_err = float(np.max(np.abs(np.asarray(out) - np.asarray(ref))))

    if max_err < 5e-2:
        print("KERNEL_OK")
    else:
        print(f"KERNEL_MISMATCH max_err={max_err}")
</pallas_src>

<mosaic_0001>
module attributes {stable_mosaic.version = 11 : i64} {
  func.func @_conv_relu_kernel(%arg0: i32, %arg1: memref<392x36xbf16, #tpu.memory_space<vmem>>, %arg2: memref<36x8xbf16, #tpu.memory_space<vmem>>, %arg3: memref<392x8xbf16, #tpu.memory_space<vmem>>) attributes {dimension_semantics = [#tpu.dimension_semantics<parallel>], iteration_bounds = array<i64: 1>, scalar_prefetch = 0 : i64, scratch_operands = 0 : i64, tpu.core_type = #tpu.core_type<tc>, window_params = [{transform_indices = @transform_0, window_bounds = array<i64: 392, 36>}, {pipeline_mode = #tpu.pipeline_mode<synchronous>, transform_indices = @transform_1, window_bounds = array<i64: 36, 8>}, {transform_indices = @transform_2, window_bounds = array<i64: 392, 8>}]} {
    %c0 = arith.constant 0 : index
    %c0_0 = arith.constant 0 : index
    %0 = vector.load %arg1[%c0, %c0_0] : memref<392x36xbf16, #tpu.memory_space<vmem>>, vector<392x36xbf16>
    %c0_1 = arith.constant 0 : index
    %c0_2 = arith.constant 0 : index
    %1 = vector.load %arg2[%c0_1, %c0_2] : memref<36x8xbf16, #tpu.memory_space<vmem>>, vector<36x8xbf16>
    %cst = arith.constant dense<0.000000e+00> : vector<392x8xf32>
    %2 = tpu.matmul %0, %1, %cst {dimension_numbers = #tpu.dot_dimension_numbers<[1], [0], [0], [1], [0, 0, 1, 1], [], []>} : vector<392x36xbf16>, vector<36x8xbf16>, vector<392x8xf32> -> vector<392x8xf32>
    %cst_3 = arith.constant 0.000000e+00 : f32
    %3 = vector.broadcast %cst_3 : f32 to vector<392x8xf32>
    %4 = arith.maximumf %2, %3 : vector<392x8xf32>
    %5 = arith.truncf %4 : vector<392x8xf32> to vector<392x8xbf16>
    %c0_4 = arith.constant 0 : index
    %c0_5 = arith.constant 0 : index
    %6 = vector.load %arg3[%c0_4, %c0_5] : memref<392x8xbf16, #tpu.memory_space<vmem>>, vector<392x8xbf16>
    tpu.vector_store %arg3[%c0_4, %c0_5], %5 {strides = array<i32>} : memref<392x8xbf16, #tpu.memory_space<vmem>>, vector<392x8xbf16>,
    return
  }
  func.func @transform_0(%arg0: i32) -> (i32, i32) {
    %c0_i32 = arith.constant 0 : i32
    %c0_i32_0 = arith.constant 0 : i32
    return %arg0, %c0_i32 : i32, i32
  }
  func.func @transform_1(%arg0: i32) -> (i32, i32) {
    %c0_i32 = arith.constant 0 : i32
    %c0_i32_0 = arith.constant 0 : i32
    %c0_i32_1 = arith.constant 0 : i32
    return %c0_i32, %c0_i32_0 : i32, i32
  }
  func.func @transform_2(%arg0: i32) -> (i32, i32) {
    %c0_i32 = arith.constant 0 : i32
    %c0_i32_0 = arith.constant 0 : i32
    return %arg0, %c0_i32 : i32, i32
  }
}

</mosaic_0001>

<bundles_post_ra>
// kernel: tpu_custom_call.1
= control target key start
LH: loop header
LB: loop body
LE: loop exit
PB: predicated region body
PF: predicated region fallthrough
CT: control target
= control target key end

     0   :  { %v1137_v0 = vmov 0.0   ;;  %vm1138_vm0 = vmmov 0   ;;  %vm280_vm1 = vcmask 1041408   ;;  %vm204_vm2 = vcmask 293888   ;;  %s1515_s1 = inlined_call_operand.vmem [shape: bf16[36,8], index: 1, kind: input, shape index: {}]   ;;  %s1516_s0 = inlined_call_operand.vmem [shape: bf16[392,36], index: 0, kind: input, shape index: {}]   ;;  %s1517_s2 = inlined_call_operand.vmem [shape: bf16[392,8], index: 2, kind: output, shape index: {}]  }
   0x1   :  { %995 = vmatprep.subr.bf16.mxu0 %v1137_v0  ;;  %v1109_v1 = vld [vmem:[%s1515_s1] sm:$0xff]   ;;  %1101 = vmatprep.subr.bf16.mxu1 %v1137_v0  ;;  %v1110_v2 = vld [vmem:[%s1515_s1 + $0x8] sm:$0xff]   ;;  %v1111_v3 = vld [vmem:[%s1515_s1 + $0x10] ss:$0 sps:$4 sm:$0x33]   ;;  %vm762_vm3 = vcmask 60416  }
   0x2   :  { %1001 = vmatprep.mubr.msk.bf16.mxu0 %vm1138_vm0, %v1137_v0  ;;  %1053 = vmatprep.mubr.msk.bf16.mxu1 %vm1138_vm0, %v1137_v0  ;;  %v282_v4 = vsel %vm280_vm1, %v1111_v3, 0  ;;  %v1112_v5 = vld [vmem:[%s1516_s0] sm:$0xff]   ;;  %v1113_v6 = vld [vmem:[%s1516_s0 + $0x68] sm:$0xff]   ;;  %v1115_v8 = vld [vmem:[%s1516_s0 + $0x70] sm:$0xff]  }
   0x3   :  { %996 = vmatpush3.bf16.msra.mxu0 %v1109_v1  ;;  %1104 = vmatpush3.bf16.msra.mxu1 %v1109_v1  ;;  %v1114_v7 = vld [vmem:[%s1516_s0 + $0x8] sm:$0xff]   ;;  %v1116_v9 = vld [vmem:[%s1516_s0 + $0x10] sm:$0xff]   ;;  %v1117_v10 = vld [vmem:[%s1516_s0 + $0x78] sm:$0xff]  }
   0x4   :  { %997 = vmatprep.subr.bf16.mxu0 %v1137_v0  ;;  %1102 = vmatprep.subr.bf16.mxu1 %v1137_v0  ;;  %v1118_v11 = vld [vmem:[%s1516_s0 + $0x18] sm:$0xff]   ;;  %v1119_v12 = vld [vmem:[%s1516_s0 + $0x80] sm:$0xff]   ;;  %v1121_v14 = vld [vmem:[%s1516_s0 + $0x88] sm:$0xff]  }
   0x5   :  { %v1120_v13 = vld [vmem:[%s1516_s0 + $0x20] sm:$0xff]   ;;  %v1122_v15 = vld [vmem:[%s1516_s0 + $0x28] sm:$0xff]   ;;  %v1123_v16 = vld [vmem:[%s1516_s0 + $0x90] sm:$0xff]  }
   0x6   :  { %v1124_v17 = vld [vmem:[%s1516_s0 + $0x30] sm:$0xff]   ;;  %v1125_v18 = vld [vmem:[%s1516_s0 + $0x98] sm:$0xff]   ;;  %v1127_v20 = vld [vmem:[%s1516_s0 + $0xa0] sm:$0xff]  }
   0x7   :  { %998 = vmatpush3.bf16.msra.mxu0 %v1110_v2  ;;  %1105 = vmatpush3.bf16.msra.mxu1 %v1110_v2  ;;  %v1126_v19 = vld [vmem:[%s1516_s0 + $0x38] sm:$0xff]   ;;  %v1128_v21 = vld [vmem:[%s1516_s0 + $0x40] sm:$0xff]   ;;  %v1129_v22 = vld [vmem:[%s1516_s0 + $0xa8] sm:$0xff]  }
   0x8   :  { %999 = vmatprep.subr.bf16.mxu0 %v1137_v0  ;;  %1103 = vmatprep.subr.bf16.mxu1 %v1137_v0  ;;  %v1130_v23 = vld [vmem:[%s1516_s0 + $0x48] sm:$0xff]   ;;  %v1131_v24 = vld [vmem:[%s1516_s0 + $0xb0] sm:$0xff]   ;;  %v1133_v26 = vld [vmem:[%s1516_s0 + $0xb8] sm:$0xff]  }
   0x9   :  { %v1132_v25 = vld [vmem:[%s1516_s0 + $0x50] sm:$0xff]   ;;  %v1134_v27 = vld [vmem:[%s1516_s0 + $0x58] sm:$0xff]   ;;  %v1135_v28 = vld [vmem:[%s1516_s0 + $0xc0] ss:$0 sps:$4 sm:$0xff]  }
   0xa   :  { %v1136_v29 = vld [vmem:[%s1516_s0 + $0x60] sm:$0xff]  }
   0xb   :  { %1000 = vmatpush3.bf16.msra.mxu0 %v282_v4  ;;  %1106 = vmatpush3.bf16.msra.mxu1 %v282_v4 }
   0xe   :  { %1002 = vmatmul.mubr.msk.bf16.vlgmr.msra.gmra.mrb[0].mxu0 %vm204_vm2, %v1112_v5  ;;  %1054 = vmatmul.mubr.msk.bf16.vlgmr.msra.gmra.mrb[0].mxu1 %vm204_vm2, %v1113_v6 }
   0xf   :  { %1005 = vmatprep.mubr.msk.bf16.mxu0 %vm1138_vm0, %v1137_v0  ;;  %1057 = vmatprep.mubr.msk.bf16.mxu1 %vm1138_vm0, %v1137_v0 }
  0x16   :  { %1006 = vmatmul.mubr.msk.bf16.gmra.mrb[4].mxu0 %vm204_vm2, %v1114_v7  ;;  %1058 = vmatmul.mubr.msk.bf16.gmra.mrb[4].mxu1 %vm204_vm2, %v1115_v8 }
  0x17   :  { %1009 = vmatprep.mubr.msk.bf16.mxu0 %vm1138_vm0, %v1137_v0  ;;  %1061 = vmatprep.mubr.msk.bf16.mxu1 %vm1138_vm0, %v1137_v0 }
  0x1e   :  { %1010 = vmatmul.mubr.msk.bf16.gmra.mrb[8].mxu0 %vm204_vm2, %v1116_v9  ;;  %1062 = vmatmul.mubr.msk.bf16.gmra.mrb[8].mxu1 %vm204_vm2, %v1117_v10 }
  0x1f   :  { %1013 = vmatprep.mubr.msk.bf16.mxu0 %vm1138_vm0, %v1137_v0  ;;  %1065 = vmatprep.mubr.msk.bf16.mxu1 %vm1138_vm0, %v1137_v0 }
  0x26   :  { %1014 = vmatmul.mubr.msk.bf16.gmra.mrb[12].mxu0 %vm204_vm2, %v1118_v11  ;;  %1066 = vmatmul.mubr.msk.bf16.gmra.mrb[12].mxu1 %vm204_vm2, %v1119_v12 }
  0x27   :  { %1017 = vmatprep.mubr.msk.bf16.mxu0 %vm1138_vm0, %v1137_v0  ;;  %1069 = vmatprep.mubr.msk.bf16.mxu1 %vm1138_vm0, %v1137_v0 }
  0x2e   :  { %1018 = vmatmul.mubr.msk.bf16.gmra.mrb[16].mxu0 %vm204_vm2, %v1120_v13  ;;  %1070 = vmatmul.mubr.msk.bf16.gmra.mrb[16].mxu1 %vm204_vm2, %v1121_v14 }
  0x2f   :  { %1021 = vmatprep.mubr.msk.bf16.mxu0 %vm1138_vm0, %v1137_v0  ;;  %1073 = vmatprep.mubr.msk.bf16.mxu1 %vm1138_vm0, %v1137_v0 }
  0x36   :  { %1022 = vmatmul.mubr.msk.bf16.gmra.mrb[20].mxu0 %vm204_vm2, %v1122_v15  ;;  %1074 = vmatmul.mubr.msk.bf16.gmra.mrb[20].mxu1 %vm204_vm2, %v1123_v16 }
  0x37   :  { %1025 = vmatprep.mubr.msk.bf16.mxu0 %vm1138_vm0, %v1137_v0  ;;  %1077 = vmatprep.mubr.msk.bf16.mxu1 %vm1138_vm0, %v1137_v0 }
  0x3e   :  { %1026 = vmatmul.mubr.msk.bf16.gmra.mrb[24].mxu0 %vm204_vm2, %v1124_v17  ;;  %1078 = vmatmul.mubr.msk.bf16.gmra.mrb[24].mxu1 %vm204_vm2, %v1125_v18 }
  0x3f   :  { %1029 = vmatprep.mubr.msk.bf16.mxu0 %vm1138_vm0, %v1137_v0  ;;  %1081 = vmatprep.mubr.msk.bf16.mxu1 %vm1138_vm0, %v1137_v0 }
  0x46   :  { %1030 = vmatmul.mubr.msk.bf16.gmra.mrb[28].mxu0 %vm204_vm2, %v1126_v19  ;;  %1082 = vmatmul.mubr.msk.bf16.gmra.mrb[28].mxu1 %vm204_vm2, %v1127_v20 }
  0x47   :  { %1033 = vmatprep.mubr.msk.bf16.mxu0 %vm1138_vm0, %v1137_v0  ;;  %1085 = vmatprep.mubr.msk.bf16.mxu1 %vm1138_vm0, %v1137_v0 }
  0x4e   :  { %1034 = vmatmul.mubr.msk.bf16.gmra.mrb[32].mxu0 %vm204_vm2, %v1128_v21  ;;  %1086 = vmatmul.mubr.msk.bf16.gmra.mrb[32].mxu1 %vm204_vm2, %v1129_v22 }
  0x4f   :  { %1037 = vmatprep.mubr.msk.bf16.mxu0 %vm1138_vm0, %v1137_v0  ;;  %1089 = vmatprep.mubr.msk.bf16.mxu1 %vm1138_vm0, %v1137_v0 }
  0x56   :  { %1038 = vmatmul.mubr.msk.bf16.gmra.mrb[36].mxu0 %vm204_vm2, %v1130_v23  ;;  %1090 = vmatmul.mubr.msk.bf16.gmra.mrb[36].mxu1 %vm204_vm2, %v1131_v24 }
  0x57   :  { %1041 = vmatprep.mubr.msk.bf16.mxu0 %vm1138_vm0, %v1137_v0  ;;  %1093 = vmatprep.mubr.msk.bf16.mxu1 %vm1138_vm0, %v1137_v0 }
  0x5e   :  { %1042 = vmatmul.mubr.msk.bf16.gmra.mrb[40].mxu0 %vm204_vm2, %v1132_v25  ;;  %1094 = vmatmul.mubr.msk.bf16.gmra.mrb[40].mxu1 %vm204_vm2, %v1133_v26 }
  0x5f   :  { %1045 = vmatprep.mubr.msk.bf16.mxu0 %vm1138_vm0, %v1137_v0  ;;  %1097 = vmatprep.mubr.msk.bf16.mxu1 %vm1138_vm0, %v1137_v0 }
  0x66   :  { %1046 = vmatmul.mubr.msk.bf16.gmra.mrb[44].mxu0 %vm204_vm2, %v1134_v27  ;;  %1098 = vmatmul.mubr.msk.bf16.gmra.mrb[44].mxu1 %vm204_vm2, %v1135_v28 }
  0x67   :  { %1049 = vmatprep.mubr.msk.bf16.mxu0 %vm1138_vm0, %v1137_v0 }
  0x6e   :  { %1050 = vmatmul.mubr.msk.bf16.gmra.mrb[48].mxu0 %vm204_vm2, %v1136_v29 }
  0xe1   :  { %v318_v30 = vpop.f32.mrb[0].mxu0  ;;  %v422_v31 = vpop.f32.mrb[0].mxu1 }
  0xe2   :  { %v516_v32 = vmax.f32 %v318_v30, 0.0  ;;  %v1003_v33 = vpop.f32.mrb[1].mxu0  ;;  %v542_v34 = vmax.f32 %v422_v31, 0.0  ;;  %v1055_v35 = vpop.f32.mrb[1].mxu1 }
  0xe3   :  { %v321_v36 = vpop.f32.mrb[2].mxu0  ;;  %v425_v37 = vpop.f32.mrb[2].mxu1 }
  0xe4   :  { %v918_v38 = vpack.c.bf16 %v516_v32, %v516_v32  ;;  %v517_v39 = vmax.f32 %v321_v36, 0.0  ;;  %v1004_v40 = vpop.f32.mrb[3].mxu0  ;;  %v944_v41 = vpack.c.bf16 %v542_v34, %v542_v34  ;;  %v543_v42 = vmax.f32 %v425_v37, 0.0  ;;  %v1056_v43 = vpop.f32.mrb[3].mxu1 }
  0xe6   :  { %763 = vst.msk [vmem:[%s1517_s2] sm:$0xf] %vm762_vm3, %v918_v38  ;;  %v919_v44 = vpack.c.bf16 %v517_v39, %v517_v39  ;;  %789 = vst.msk [vmem:[%s1517_s2 + $0x68] sm:$0xf] %vm762_vm3, %v944_v41  ;;  %v945_v45 = vpack.c.bf16 %v543_v42, %v543_v42 }
  0xe8   :  { %764 = vst.msk [vmem:[%s1517_s2 + $0x4] sm:$0xf] %vm762_vm3, %v919_v44  ;;  %790 = vst.msk [vmem:[%s1517_s2 + $0x6c] sm:$0xf] %vm762_vm3, %v945_v45 }
  0xe9   :  { %v326_v46 = vpop.f32.mrb[4].mxu0  ;;  %v430_v47 = vpop.f32.mrb[4].mxu1 }
  0xea   :  { %v518_v48 = vmax.f32 %v326_v46, 0.0  ;;  %v1007_v49 = vpop.f32.mrb[5].mxu0  ;;  %v544_v50 = vmax.f32 %v430_v47, 0.0  ;;  %v1059_v51 = vpop.f32.mrb[5].mxu1 }
  0xeb   :  { %v329_v52 = vpop.f32.mrb[6].mxu0  ;;  %v433_v53 = vpop.f32.mrb[6].mxu1 }
  0xec   :  { %v920_v54 = vpack.c.bf16 %v518_v48, %v518_v48  ;;  %v519_v55 = vmax.f32 %v329_v52, 0.0  ;;  %v1008_v56 = vpop.f32.mrb[7].mxu0  ;;  %v946_v57 = vpack.c.bf16 %v544_v50, %v544_v50  ;;  %v545_v58 = vmax.f32 %v433_v53, 0.0  ;;  %v1060_v59 = vpop.f32.mrb[7].mxu1 }
  0xee   :  { %765 = vst.msk [vmem:[%s1517_s2 + $0x8] sm:$0xf] %vm762_vm3, %v920_v54  ;;  %v921_v60 = vpack.c.bf16 %v519_v55, %v519_v55  ;;  %791 = vst.msk [vmem:[%s1517_s2 + $0x70] sm:$0xf] %vm762_vm3, %v946_v57  ;;  %v947_v61 = vpack.c.bf16 %v545_v58, %v545_v58 }
  0xf0   :  { %766 = vst.msk [vmem:[%s1517_s2 + $0xc] sm:$0xf] %vm762_vm3, %v921_v60  ;;  %792 = vst.msk [vmem:[%s1517_s2 + $0x74] sm:$0xf] %vm762_vm3, %v947_v61 }
  0xf1   :  { %v334_v62 = vpop.f32.mrb[8].mxu0  ;;  %v438_v63 = vpop.f32.mrb[8].mxu1 }
  0xf2   :  { %v520_v0 = vmax.f32 %v334_v62, 0.0  ;;  %v1011_v1 = vpop.f32.mrb[9].mxu0  ;;  %v546_v2 = vmax.f32 %v438_v63, 0.0  ;;  %v1063_v3 = vpop.f32.mrb[9].mxu1 }
  0xf3   :  { %v337_v4 = vpop.f32.mrb[10].mxu0  ;;  %v441_v5 = vpop.f32.mrb[10].mxu1 }
  0xf4   :  { %v922_v6 = vpack.c.bf16 %v520_v0, %v520_v0  ;;  %v521_v7 = vmax.f32 %v337_v4, 0.0  ;;  %v1012_v8 = vpop.f32.mrb[11].mxu0  ;;  %v948_v9 = vpack.c.bf16 %v546_v2, %v546_v2  ;;  %v547_v10 = vmax.f32 %v441_v5, 0.0  ;;  %v1064_v11 = vpop.f32.mrb[11].mxu1 }
  0xf6   :  { %767 = vst.msk [vmem:[%s1517_s2 + $0x10] sm:$0xf] %vm762_vm3, %v922_v6  ;;  %v923_v12 = vpack.c.bf16 %v521_v7, %v521_v7  ;;  %793 = vst.msk [vmem:[%s1517_s2 + $0x78] sm:$0xf] %vm762_vm3, %v948_v9  ;;  %v949_v13 = vpack.c.bf16 %v547_v10, %v547_v10 }
  0xf8   :  { %768 = vst.msk [vmem:[%s1517_s2 + $0x14] sm:$0xf] %vm762_vm3, %v923_v12  ;;  %794 = vst.msk [vmem:[%s1517_s2 + $0x7c] sm:$0xf] %vm762_vm3, %v949_v13 }
  0xf9   :  { %v342_v14 = vpop.f32.mrb[12].mxu0  ;;  %v446_v15 = vpop.f32.mrb[12].mxu1 }
  0xfa   :  { %v522_v16 = vmax.f32 %v342_v14, 0.0  ;;  %v1015_v17 = vpop.f32.mrb[13].mxu0  ;;  %v548_v18 = vmax.f32 %v446_v15, 0.0  ;;  %v1067_v19 = vpop.f32.mrb[13].mxu1 }
  0xfb   :  { %v345_v20 = vpop.f32.mrb[14].mxu0  ;;  %v449_v21 = vpop.f32.mrb[14].mxu1 }
  0xfc   :  { %v924_v22 = vpack.c.bf16 %v522_v16, %v522_v16  ;;  %v523_v23 = vmax.f32 %v345_v20, 0.0  ;;  %v1016_v24 = vpop.f32.mrb[15].mxu0  ;;  %v950_v25 = vpack.c.bf16 %v548_v18, %v548_v18  ;;  %v549_v26 = vmax.f32 %v449_v21, 0.0  ;;  %v1068_v27 = vpop.f32.mrb[15].mxu1 }
  0xfe   :  { %769 = vst.msk [vmem:[%s1517_s2 + $0x18] sm:$0xf] %vm762_vm3, %v924_v22  ;;  %v925_v28 = vpack.c.bf16 %v523_v23, %v523_v23  ;;  %795 = vst.msk [vmem:[%s1517_s2 + $0x80] sm:$0xf] %vm762_vm3, %v950_v25  ;;  %v951_v29 = vpack.c.bf16 %v549_v26, %v549_v26 }
 0x100   :  { %770 = vst.msk [vmem:[%s1517_s2 + $0x1c] sm:$0xf] %vm762_vm3, %v925_v28  ;;  %796 = vst.msk [vmem:[%s1517_s2 + $0x84] sm:$0xf] %vm762_vm3, %v951_v29 }
 0x101   :  { %v350_v30 = vpop.f32.mrb[16].mxu0  ;;  %v454_v31 = vpop.f32.mrb[16].mxu1 }
 0x102   :  { %v524_v32 = vmax.f32 %v350_v30, 0.0  ;;  %v1019_v33 = vpop.f32.mrb[17].mxu0  ;;  %v550_v34 = vmax.f32 %v454_v31, 0.0  ;;  %v1071_v35 = vpop.f32.mrb[17].mxu1 }
 0x103   :  { %v353_v36 = vpop.f32.mrb[18].mxu0  ;;  %v457_v37 = vpop.f32.mrb[18].mxu1 }
 0x104   :  { %v926_v38 = vpack.c.bf16 %v524_v32, %v524_v32  ;;  %v525_v39 = vmax.f32 %v353_v36, 0.0  ;;  %v1020_v40 = vpop.f32.mrb[19].mxu0  ;;  %v952_v41 = vpack.c.bf16 %v550_v34, %v550_v34  ;;  %v551_v42 = vmax.f32 %v457_v37, 0.0  ;;  %v1072_v43 = vpop.f32.mrb[19].mxu1 }
 0x106   :  { %771 = vst.msk [vmem:[%s1517_s2 + $0x20] sm:$0xf] %vm762_vm3, %v926_v38  ;;  %v927_v44 = vpack.c.bf16 %v525_v39, %v525_v39  ;;  %797 = vst.msk [vmem:[%s1517_s2 + $0x88] sm:$0xf] %vm762_vm3, %v952_v41  ;;  %v953_v45 = vpack.c.bf16 %v551_v42, %v551_v42 }
 0x108   :  { %772 = vst.msk [vmem:[%s1517_s2 + $0x24] sm:$0xf] %vm762_vm3, %v927_v44  ;;  %798 = vst.msk [vmem:[%s1517_s2 + $0x8c] sm:$0xf] %vm762_vm3, %v953_v45 }
 0x109   :  { %v358_v46 = vpop.f32.mrb[20].mxu0  ;;  %v462_v47 = vpop.f32.mrb[20].mxu1 }
 0x10a   :  { %v526_v48 = vmax.f32 %v358_v46, 0.0  ;;  %v1023_v49 = vpop.f32.mrb[21].mxu0  ;;  %v552_v50 = vmax.f32 %v462_v47, 0.0  ;;  %v1075_v51 = vpop.f32.mrb[21].mxu1 }
 0x10b   :  { %v361_v52 = vpop.f32.mrb[22].mxu0  ;;  %v465_v53 = vpop.f32.mrb[22].mxu1 }
 0x10c   :  { %v928_v54 = vpack.c.bf16 %v526_v48, %v526_v48  ;;  %v527_v55 = vmax.f32 %v361_v52, 0.0  ;;  %v1024_v56 = vpop.f32.mrb[23].mxu0  ;;  %v954_v57 = vpack.c.bf16 %v552_v50, %v552_v50  ;;  %v553_v58 = vmax.f32 %v465_v53, 0.0  ;;  %v1076_v59 = vpop.f32.mrb[23].mxu1 }
 0x10e   :  { %773 = vst.msk [vmem:[%s1517_s2 + $0x28] sm:$0xf] %vm762_vm3, %v928_v54  ;;  %v929_v60 = vpack.c.bf16 %v527_v55, %v527_v55  ;;  %799 = vst.msk [vmem:[%s1517_s2 + $0x90] sm:$0xf] %vm762_vm3, %v954_v57  ;;  %v955_v61 = vpack.c.bf16 %v553_v58, %v553_v58 }
 0x110   :  { %774 = vst.msk [vmem:[%s1517_s2 + $0x2c] sm:$0xf] %vm762_vm3, %v929_v60  ;;  %800 = vst.msk [vmem:[%s1517_s2 + $0x94] sm:$0xf] %vm762_vm3, %v955_v61 }
 0x111   :  { %v366_v62 = vpop.f32.mrb[24].mxu0  ;;  %v470_v63 = vpop.f32.mrb[24].mxu1 }
 0x112   :  { %v528_v0 = vmax.f32 %v366_v62, 0.0  ;;  %v1027_v1 = vpop.f32.mrb[25].mxu0  ;;  %v554_v2 = vmax.f32 %v470_v63, 0.0  ;;  %v1079_v3 = vpop.f32.mrb[25].mxu1 }
 0x113   :  { %v369_v4 = vpop.f32.mrb[26].mxu0  ;;  %v473_v5 = vpop.f32.mrb[26].mxu1 }
 0x114   :  { %v930_v6 = vpack.c.bf16 %v528_v0, %v528_v0  ;;  %v529_v7 = vmax.f32 %v369_v4, 0.0  ;;  %v1028_v8 = vpop.f32.mrb[27].mxu0  ;;  %v956_v9 = vpack.c.bf16 %v554_v2, %v554_v2  ;;  %v555_v10 = vmax.f32 %v473_v5, 0.0  ;;  %v1080_v11 = vpop.f32.mrb[27].mxu1 }
 0x116   :  { %775 = vst.msk [vmem:[%s1517_s2 + $0x30] sm:$0xf] %vm762_vm3, %v930_v6  ;;  %v931_v12 = vpack.c.bf16 %v529_v7, %v529_v7  ;;  %801 = vst.msk [vmem:[%s1517_s2 + $0x98] sm:$0xf] %vm762_vm3, %v956_v9  ;;  %v957_v13 = vpack.c.bf16 %v555_v10, %v555_v10 }
 0x118   :  { %776 = vst.msk [vmem:[%s1517_s2 + $0x34] sm:$0xf] %vm762_vm3, %v931_v12  ;;  %802 = vst.msk [vmem:[%s1517_s2 + $0x9c] sm:$0xf] %vm762_vm3, %v957_v13 }
 0x119   :  { %v374_v14 = vpop.f32.mrb[28].mxu0  ;;  %v478_v15 = vpop.f32.mrb[28].mxu1 }
 0x11a   :  { %v530_v16 = vmax.f32 %v374_v14, 0.0  ;;  %v1031_v17 = vpop.f32.mrb[29].mxu0  ;;  %v556_v18 = vmax.f32 %v478_v15, 0.0  ;;  %v1083_v19 = vpop.f32.mrb[29].mxu1 }
 0x11b   :  { %v377_v20 = vpop.f32.mrb[30].mxu0  ;;  %v481_v21 = vpop.f32.mrb[30].mxu1 }
 0x11c   :  { %v932_v22 = vpack.c.bf16 %v530_v16, %v530_v16  ;;  %v531_v23 = vmax.f32 %v377_v20, 0.0  ;;  %v1032_v24 = vpop.f32.mrb[31].mxu0  ;;  %v958_v25 = vpack.c.bf16 %v556_v18, %v556_v18  ;;  %v557_v26 = vmax.f32 %v481_v21, 0.0  ;;  %v1084_v27 = vpop.f32.mrb[31].mxu1 }
 0x11e   :  { %777 = vst.msk [vmem:[%s1517_s2 + $0x38] sm:$0xf] %vm762_vm3, %v932_v22  ;;  %v933_v28 = vpack.c.bf16 %v531_v23, %v531_v23  ;;  %803 = vst.msk [vmem:[%s1517_s2 + $0xa0] sm:$0xf] %vm762_vm3, %v958_v25  ;;  %v959_v29 = vpack.c.bf16 %v557_v26, %v557_v26 }
 0x120   :  { %778 = vst.msk [vmem:[%s1517_s2 + $0x3c] sm:$0xf] %vm762_vm3, %v933_v28  ;;  %804 = vst.msk [vmem:[%s1517_s2 + $0xa4] sm:$0xf] %vm762_vm3, %v959_v29 }
 0x121   :  { %v382_v30 = vpop.f32.mrb[32].mxu0  ;;  %v486_v31 = vpop.f32.mrb[32].mxu1 }
 0x122   :  { %v532_v32 = vmax.f32 %v382_v30, 0.0  ;;  %v1035_v33 = vpop.f32.mrb[33].mxu0  ;;  %v558_v34 = vmax.f32 %v486_v31, 0.0  ;;  %v1087_v35 = vpop.f32.mrb[33].mxu1 }
 0x123   :  { %v385_v36 = vpop.f32.mrb[34].mxu0  ;;  %v489_v37 = vpop.f32.mrb[34].mxu1 }
 0x124   :  { %v934_v38 = vpack.c.bf16 %v532_v32, %v532_v32  ;;  %v533_v39 = vmax.f32 %v385_v36, 0.0  ;;  %v1036_v40 = vpop.f32.mrb[35].mxu0  ;;  %v960_v41 = vpack.c.bf16 %v558_v34, %v558_v34  ;;  %v559_v42 = vmax.f32 %v489_v37, 0.0  ;;  %v1088_v43 = vpop.f32.mrb[35].mxu1 }
 0x126   :  { %779 = vst.msk [vmem:[%s1517_s2 + $0x40] sm:$0xf] %vm762_vm3, %v934_v38  ;;  %v935_v44 = vpack.c.bf16 %v533_v39, %v533_v39  ;;  %805 = vst.msk [vmem:[%s1517_s2 + $0xa8] sm:$0xf] %vm762_vm3, %v960_v41  ;;  %v961_v45 = vpack.c.bf16 %v559_v42, %v559_v42 }
 0x128   :  { %780 = vst.msk [vmem:[%s1517_s2 + $0x44] sm:$0xf] %vm762_vm3, %v935_v44  ;;  %806 = vst.msk [vmem:[%s1517_s2 + $0xac] sm:$0xf] %vm762_vm3, %v961_v45 }
 0x129   :  { %v390_v46 = vpop.f32.mrb[36].mxu0  ;;  %v494_v47 = vpop.f32.mrb[36].mxu1 }
 0x12a   :  { %v534_v48 = vmax.f32 %v390_v46, 0.0  ;;  %v1039_v49 = vpop.f32.mrb[37].mxu0  ;;  %v560_v50 = vmax.f32 %v494_v47, 0.0  ;;  %v1091_v51 = vpop.f32.mrb[37].mxu1 }
 0x12b   :  { %v393_v52 = vpop.f32.mrb[38].mxu0  ;;  %v497_v53 = vpop.f32.mrb[38].mxu1 }
 0x12c   :  { %v936_v54 = vpack.c.bf16 %v534_v48, %v534_v48  ;;  %v535_v55 = vmax.f32 %v393_v52, 0.0  ;;  %v1040_v56 = vpop.f32.mrb[39].mxu0  ;;  %v962_v57 = vpack.c.bf16 %v560_v50, %v560_v50  ;;  %v561_v58 = vmax.f32 %v497_v53, 0.0  ;;  %v1092_v59 = vpop.f32.mrb[39].mxu1 }
 0x12e   :  { %781 = vst.msk [vmem:[%s1517_s2 + $0x48] sm:$0xf] %vm762_vm3, %v936_v54  ;;  %v937_v60 = vpack.c.bf16 %v535_v55, %v535_v55  ;;  %807 = vst.msk [vmem:[%s1517_s2 + $0xb0] sm:$0xf] %vm762_vm3, %v962_v57  ;;  %v963_v61 = vpack.c.bf16 %v561_v58, %v561_v58 }
 0x130   :  { %782 = vst.msk [vmem:[%s1517_s2 + $0x4c] sm:$0xf] %vm762_vm3, %v937_v60  ;;  %808 = vst.msk [vmem:[%s1517_s2 + $0xb4] sm:$0xf] %vm762_vm3, %v963_v61 }
 0x131   :  { %v398_v62 = vpop.f32.mrb[40].mxu0  ;;  %v502_v63 = vpop.f32.mrb[40].mxu1 }
 0x132   :  { %v536_v0 = vmax.f32 %v398_v62, 0.0  ;;  %v1043_v1 = vpop.f32.mrb[41].mxu0  ;;  %v562_v2 = vmax.f32 %v502_v63, 0.0  ;;  %v1095_v3 = vpop.f32.mrb[41].mxu1 }
 0x133   :  { %v401_v4 = vpop.f32.mrb[42].mxu0  ;;  %v505_v5 = vpop.f32.mrb[42].mxu1 }
 0x134   :  { %v938_v6 = vpack.c.bf16 %v536_v0, %v536_v0  ;;  %v537_v7 = vmax.f32 %v401_v4, 0.0  ;;  %v1044_v8 = vpop.f32.mrb[43].mxu0  ;;  %v964_v9 = vpack.c.bf16 %v562_v2, %v562_v2  ;;  %v563_v10 = vmax.f32 %v505_v5, 0.0  ;;  %v1096_v11 = vpop.f32.mrb[43].mxu1 }
 0x136   :  { %783 = vst.msk [vmem:[%s1517_s2 + $0x50] sm:$0xf] %vm762_vm3, %v938_v6  ;;  %v939_v12 = vpack.c.bf16 %v537_v7, %v537_v7  ;;  %809 = vst.msk [vmem:[%s1517_s2 + $0xb8] sm:$0xf] %vm762_vm3, %v964_v9  ;;  %v965_v13 = vpack.c.bf16 %v563_v10, %v563_v10 }
 0x138   :  { %784 = vst.msk [vmem:[%s1517_s2 + $0x54] sm:$0xf] %vm762_vm3, %v939_v12  ;;  %810 = vst.msk [vmem:[%s1517_s2 + $0xbc] sm:$0xf] %vm762_vm3, %v965_v13 }
 0x139   :  { %v406_v14 = vpop.f32.mrb[44].mxu0  ;;  %v510_v15 = vpop.f32.mrb[44].mxu1 }
 0x13a   :  { %v538_v16 = vmax.f32 %v406_v14, 0.0  ;;  %v1047_v17 = vpop.f32.mrb[45].mxu0  ;;  %v564_v18 = vmax.f32 %v510_v15, 0.0  ;;  %v1099_v19 = vpop.f32.mrb[45].mxu1 }
 0x13b   :  { %v409_v20 = vpop.f32.mrb[46].mxu0  ;;  %v513_v21 = vpop.f32.mrb[46].mxu1 }
 0x13c   :  { %v940_v22 = vpack.c.bf16 %v538_v16, %v538_v16  ;;  %v539_v23 = vmax.f32 %v409_v20, 0.0  ;;  %v1048_v24 = vpop.f32.mrb[47].mxu0  ;;  %v966_v25 = vpack.c.bf16 %v564_v18, %v564_v18  ;;  %v1100_v26 = vpop.f32.mrb[47].mxu1 }
 0x13e   :  { %785 = vst.msk [vmem:[%s1517_s2 + $0x58] sm:$0xf] %vm762_vm3, %v940_v22  ;;  %v941_v27 = vpack.c.bf16 %v539_v23, %v539_v23  ;;  %811 = vst.msk [vmem:[%s1517_s2 + $0xc0] sm:$0xf] %vm762_vm3, %v966_v25 }
 0x140   :  { %786 = vst.msk [vmem:[%s1517_s2 + $0x5c] sm:$0xf] %vm762_vm3, %v941_v27 }
 0x141   :  { %v414_v28 = vpop.f32.mrb[48].mxu0 }
 0x142   :  { %v540_v29 = vmax.f32 %v414_v28, 0.0  ;;  %v1051_v30 = vpop.f32.mrb[49].mxu0 }
 0x143   :  { %v417_v31 = vpop.f32.mrb[50].mxu0 }
 0x144   :  { %v942_v32 = vpack.c.bf16 %v540_v29, %v540_v29  ;;  %v541_v33 = vmax.f32 %v417_v31, 0.0  ;;  %v1052_v34 = vpop.f32.mrb[51].mxu0 }
 0x146   :  { %787 = vst.msk [vmem:[%s1517_s2 + $0x60] sm:$0xf] %vm762_vm3, %v942_v32  ;;  %v943_v35 = vpack.c.bf16 %v541_v33, %v541_v33 }
 0x148   :  { %788 = vst.msk [vmem:[%s1517_s2 + $0x64] sm:$0xf] %vm762_vm3, %v943_v35 }

</bundles_post_ra>
